<compile_context>
chip_gen: v5e
topology: v5e:2x2
jax: 0.10.0
libtpu: 0.0.40
codegen_flags: <defaults>
</compile_context>

<pallas_src>
import jax
import jax.numpy as jnp
from jax import lax
from jax.experimental import pallas as pl
from jax.experimental.pallas import tpu as pltpu


def _make_cgcn_kernel(fuse_expand: bool, hw_valid: int):
    """Build the cGCN kernel. `fuse_expand` picks (we@c_mat)@zeta vs split."""

    def kernel(x_ref, wzk_ref, bzk_ref, w1_ref, b1_ref,
               w2_ref, b2_ref, we_ref, be_ref, out_ref):
        Bt, C, HWp = x_ref.shape
        C2 = w1_ref.shape[0]
        C4 = w2_ref.shape[0]

        # Tiny weights: load once per grid step, outside the batch loop.
        wzk = wzk_ref[...]          # [C2+C4, C]  bf16  (zeta & kappa fused)
        bzk = bzk_ref[...]          # [C2+C4, 1]  f32
        w1 = w1_ref[...]            # [C2, C2]    f32
        b1 = b1_ref[...]            # [1,  C2]    f32
        w2 = w2_ref[...]            # [C4, C4]    f32
        b2 = b2_ref[...]            # [C4, 1]     f32
        we = we_ref[...]            # [C,  C4]    f32
        be = be_ref[...]            # [C,  1]     f32

        if HWp != hw_valid:
            # Zero out padded spatial lanes after the (biased) projection so
            # the HW contraction in F_c is exact despite lane padding.
            lane = lax.broadcasted_iota(jnp.int32, (1, HWp), 1)
            lane_mask = (lane < hw_valid).astype(jnp.float32)
        else:
            lane_mask = None

        dn_last = (((1,), (1,)), ((), ()))   # contract last dim of both

        def one_batch(b, carry):
            # fused zeta/kappa 1x1 conv == one bf16 channel matmul, f32 accum
            xb = x_ref[b].astype(jnp.bfloat16)                      # [C, HWp]
            proj = jnp.dot(wzk, xb,
                           preferred_element_type=jnp.float32) + bzk
            if lane_mask is not None:
                proj = proj * lane_mask
            proj = proj.astype(jnp.bfloat16)
            zeta = proj[:C2]                                        # [C2, HWp]
            kappa = proj[C2:]                                       # [C4, HWp]

            # F_c = kappa @ zeta^T  (contract over the spatial/lane dim)
            fc = lax.dot_general(kappa, zeta, dn_last,
                                 preferred_element_type=jnp.float32)  # [C4,C2]

            # global softmax over all c4*c2 elements (f32)
            m = jnp.max(fc, keepdims=True)                          # [1, 1]
            e = jnp.exp(fc - m)
            inv = pl.reciprocal(jnp.sum(e, keepdims=True), approx=False)
            fc = e * inv

            # relu(F_c + conv1(F_c)) in the [C4, C2] orientation:
            #   A + A @ W1^T + b1_row   (transpose of torch's [C2, C4] view)
            a1 = fc + lax.dot_general(fc, w1, dn_last,
                                      preferred_element_type=jnp.float32) + b1
            a1 = jnp.maximum(a1, 0.0)                               # [C4, C2]

            # conv2 over the C4 channel dim:  W2 @ A + b2
            c_mat = jnp.dot(w2, a1,
                            preferred_element_type=jnp.float32) + b2  # [C4,C2]

            if fuse_expand:
                # (we @ c_mat) @ zeta: tiny [C,C4]x[C4,C2] then one big matmul
                # contracting K = C2 (fully feeds a 256-wide MXU), and drops
                # the [C4, HWp] intermediate.
                wc = jnp.dot(we, c_mat,
                             preferred_element_type=jnp.float32)       # [C,C2]
                out = jnp.dot(wc.astype(jnp.bfloat16), zeta,
                              preferred_element_type=jnp.float32) + be
            else:
                # split form (K = C2 then K = C4) — kept for the 128-wide MXU
                y = jnp.dot(c_mat.astype(jnp.bfloat16), zeta,
                            preferred_element_type=jnp.float32)        # [C4,HWp]
                out = jnp.dot(we.astype(jnp.bfloat16),
                              y.astype(jnp.bfloat16),
                              preferred_element_type=jnp.float32) + be

            # residual: re-index x_ref[b] here (VMEM-resident input block)
            # instead of keeping the [C, HWp] slab live across the body.
            out_ref[b] = (x_ref[b].astype(jnp.float32)
                          + out).astype(out_ref.dtype)
            return carry

        # fori_loop bounds per-batch live ranges; unroll keeps LLO scheduler
        # visibility and lets batch b+1's projection matmul hide batch b's
        # softmax/GCN bubble.
        unroll = True if Bt <= 4 else 2
        lax.fori_loop(0, Bt, one_batch, 0, unroll=unroll)

    return kernel


def cgcn_forward(x_nchw, params):
    B, C, H, W = x_nchw.shape
    HW = H * W
    C2, C4 = C // 2, C // 4
    dtype = x_nchw.dtype

    # ---- device-generation budgets -----------------------------------------
    kind = ""
    try:
        kind = jax.devices()[0].device_kind.lower()
    except Exception:
        pass
    is_v7 = ("v7" in kind) or ("7x" in kind)
    is_v5 = "v5" in kind
    if is_v7:
        vmem_limit = 48 << 20       # 64 MiB physical VMEM per TensorCore
        block_target = 5 << 20
    else:                           # v5e / v6e: 128 MiB physical VMEM
        vmem_limit = 96 << 20
        block_target = 12 << 20
    fuse_expand = not is_v5         # 256-wide MXU on v6e / v7x

    # ---- lane-dense spatial layout (pad HW to a multiple of 128) -----------
    HWp = 128 * pl.cdiv(HW, 128)
    x_flat = x_nchw.reshape(B, C, HW)
    if HWp != HW:
        x_flat = jnp.pad(x_flat, ((0, 0), (0, 0), (0, HWp - HW)))

    # ---- weights (zeta/kappa fused; big-matmul operand pre-cast to bf16) ---
    wz, bz, wk, bk, w1, b1, w2, b2, we, be = params
    wzk = jnp.concatenate([wz, wk], axis=0).astype(jnp.bfloat16)   # [(C2+C4),C]
    bzk = jnp.concatenate([bz, bk], axis=0).reshape(C2 + C4, 1).astype(jnp.float32)
    w1r = w1.astype(jnp.float32)
    b1r = b1.reshape(1, C2).astype(jnp.float32)
    w2r = w2.astype(jnp.float32)
    b2r = b2.reshape(C4, 1).astype(jnp.float32)
    wer = we.astype(jnp.float32)
    ber = be.reshape(C, 1).astype(jnp.float32)

    # ---- batch-block (Bt) sizing --------------------------------------------
    itemsize = x_flat.dtype.itemsize
    slab = C * HWp * itemsize                   # one batch element, I/O dtype
    # f32 intermediates for up to 2 concurrently-live batches (unroll=2):
    inter = 6 * C * HWp * 4
    cap_vmem = max(1, (vmem_limit - inter - (2 << 20)) // (4 * slab))
    cap_tgt = max(1, block_target // slab)
    Bt = int(min(B, cap_vmem, cap_tgt))
    if is_v7 and B >= 2:
        # keep >= 2 grid steps so the "parallel" batch axis feeds both TCs
        Bt = min(Bt, (B + 1) // 2)
    Bt = max(1, Bt)

    # ---- pad B to a multiple of Bt (cdiv grid, no divisor degeneration) ----
    n_blocks = pl.cdiv(B, Bt)
    Bp = Bt * n_blocks
    if Bp != B:
        x_flat = jnp.pad(x_flat, ((0, Bp - B), (0, 0), (0, 0)))
    grid = (n_blocks,)

    def full(a):
        shape = a.shape
        return pl.BlockSpec(shape, lambda i: (0,) * len(shape))

    out = pl.pallas_call(
        _make_cgcn_kernel(fuse_expand, HW),
        out_shape=jax.ShapeDtypeStruct((Bp, C, HWp), dtype),
        grid_spec=pltpu.PrefetchScalarGridSpec(
            num_scalar_prefetch=0,
            grid=grid,
            in_specs=[
                pl.BlockSpec((Bt, C, HWp), lambda i: (i, 0, 0)),
                full(wzk), full(bzk),
                full(w1r), full(b1r),
                full(w2r), full(b2r),
                full(wer), full(ber),
            ],
            out_specs=pl.BlockSpec((Bt, C, HWp), lambda i: (i, 0, 0)),
        ),
        compiler_params=pltpu.CompilerParams(
            dimension_semantics=("parallel",),    # batch blocks independent
            vmem_limit_bytes=vmem_limit),
    )(x_flat, wzk, bzk, w1r, b1r, w2r, b2r, wer, ber)

    out = out[:B, :, :HW]
    return out.reshape(B, C, H, W)


def cgcn_reference(x, params):
    """Pure-JAX f32 replica of the PyTorch forward (NCHW), for correctness."""
    B, C, H, W = x.shape
    C2, C4 = C // 2, C // 4
    wz, bz, wk, bk, w1, b1, w2, b2, we, be = params
    zeta = jnp.einsum('bchw,oc->bohw', x, wz) + bz[None, :, None, None]
    zeta = zeta.reshape(B, C2, H * W)
    zeta_T = jnp.transpose(zeta, (0, 2, 1))
    kappa = jnp.einsum('bchw,oc->bohw', x, wk) + bk[None, :, None, None]
    kappa = kappa.reshape(B, C4, H * W)
    fc = jnp.matmul(kappa, zeta_T)                                    # [B,C4,C2]
    fc = jax.nn.softmax(fc.reshape(B, C4 * C2), axis=-1).reshape(B, C4, C2)
    fc = jnp.transpose(fc, (0, 2, 1))                                 # [B,C2,C4]
    fc = fc + (jnp.einsum('oi,bik->bok', w1, fc) + b1[None, :, None])
    fc = jax.nn.relu(fc)
    fc = jnp.transpose(fc, (0, 2, 1))                                 # [B,C4,C2]
    fc = jnp.einsum('oi,bik->bok', w2, fc) + b2[None, :, None]
    fc = jnp.transpose(fc, (0, 2, 1))                                 # [B,C2,C4]
    fc = jnp.matmul(zeta_T, fc)                                       # [B,HW,C4]
    fc = jnp.transpose(fc, (0, 2, 1)).reshape(B, C4, H, W)
    out = jnp.einsum('bchw,oc->bohw', fc, we) + be[None, :, None, None]
    return x + out


if __name__ == "__main__":
    B, C, H, W = 2, 8, 16, 16        # planes = 8 -> c2 = 4, c4 = 2
    C2, C4 = C // 2, C // 4

    key = jax.random.PRNGKey(0)
    keys = jax.random.split(key, 11)
    x = jax.random.normal(keys[0], (B, C, H, W), jnp.float32)
    s = 0.1
    wz = s * jax.random.normal(keys[1], (C2, C), jnp.float32)   # Conv2d(C, C/2, 1)
    bz = s * jax.random.normal(keys[2], (C2,), jnp.float32)
    wk = s * jax.random.normal(keys[3], (C4, C), jnp.float32)   # Conv2d(C, C/4, 1)
    bk = s * jax.random.normal(keys[4], (C4,), jnp.float32)
    w1 = s * jax.random.normal(keys[5], (C2, C2), jnp.float32)  # Conv1d(C/2, C/2, 1)
    b1 = s * jax.random.normal(keys[6], (C2,), jnp.float32)
    w2 = s * jax.random.normal(keys[7], (C4, C4), jnp.float32)  # Conv1d(C/4, C/4, 1)
    b2 = s * jax.random.normal(keys[8], (C4,), jnp.float32)
    we = s * jax.random.normal(keys[9], (C, C4), jnp.float32)   # Conv2d(C/4, C, 1)
    be = s * jax.random.normal(keys[10], (C,), jnp.float32)
    params = (wz, bz, wk, bk, w1, b1, w2, b2, we, be)

    out = cgcn_forward(x, params)
    jax.block_until_ready(out)

    ref = cgcn_reference(x, params)
    assert out.shape == (B, C, H, W)
    err = float(jnp.max(jnp.abs(out - ref)))
    # bf16 matmul operands with f32 accumulation -> relaxed tolerance vs the
    # f32 reference.
    assert jnp.allclose(out, ref, atol=3e-2, rtol=3e-2), (
        "max abs err = %g" % err)
    print("KERNEL_OK")
</pallas_src>

<mosaic_0001>
module attributes {stable_mosaic.version = 11 : i64} {
  func.func @kernel(%arg0: i32, %arg1: memref<2x8x256xf32, #tpu.memory_space<vmem>>, %arg2: memref<6x8xbf16, #tpu.memory_space<vmem>>, %arg3: memref<6x1xf32, #tpu.memory_space<vmem>>, %arg4: memref<4x4xf32, #tpu.memory_space<vmem>>, %arg5: memref<1x4xf32, #tpu.memory_space<vmem>>, %arg6: memref<2x2xf32, #tpu.memory_space<vmem>>, %arg7: memref<2x1xf32, #tpu.memory_space<vmem>>, %arg8: memref<8x2xf32, #tpu.memory_space<vmem>>, %arg9: memref<8x1xf32, #tpu.memory_space<vmem>>, %arg10: memref<2x8x256xf32, #tpu.memory_space<vmem>>) attributes {dimension_semantics = [#tpu.dimension_semantics<parallel>], iteration_bounds = array<i64: 1>, scalar_prefetch = 0 : i64, scratch_operands = 0 : i64, tpu.core_type = #tpu.core_type<tc>, window_params = [{transform_indices = @transform_0, window_bounds = array<i64: 2, 8, 256>}, {pipeline_mode = #tpu.pipeline_mode<synchronous>, transform_indices = @transform_1, window_bounds = array<i64: 6, 8>}, {pipeline_mode = #tpu.pipeline_mode<synchronous>, transform_indices = @transform_2, window_bounds = array<i64: 6, 1>}, {pipeline_mode = #tpu.pipeline_mode<synchronous>, transform_indices = @transform_3, window_bounds = array<i64: 4, 4>}, {pipeline_mode = #tpu.pipeline_mode<synchronous>, transform_indices = @transform_4, window_bounds = array<i64: 1, 4>}, {pipeline_mode = #tpu.pipeline_mode<synchronous>, transform_indices = @transform_5, window_bounds = array<i64: 2, 2>}, {pipeline_mode = #tpu.pipeline_mode<synchronous>, transform_indices = @transform_6, window_bounds = array<i64: 2, 1>}, {pipeline_mode = #tpu.pipeline_mode<synchronous>, transform_indices = @transform_7, window_bounds = array<i64: 8, 2>}, {pipeline_mode = #tpu.pipeline_mode<synchronous>, transform_indices = @transform_8, window_bounds = array<i64: 8, 1>}, {transform_indices = @transform_9, window_bounds = array<i64: 2, 8, 256>}]} {
    %c0 = arith.constant 0 : index
    %c0_0 = arith.constant 0 : index
    %0 = vector.load %arg2[%c0, %c0_0] : memref<6x8xbf16, #tpu.memory_space<vmem>>, vector<6x8xbf16>
    %c0_1 = arith.constant 0 : index
    %c0_2 = arith.constant 0 : index
    %1 = vector.load %arg3[%c0_1, %c0_2] : memref<6x1xf32, #tpu.memory_space<vmem>>, vector<6x1xf32>
    %c0_3 = arith.constant 0 : index
    %c0_4 = arith.constant 0 : index
    %2 = vector.load %arg4[%c0_3, %c0_4] : memref<4x4xf32, #tpu.memory_space<vmem>>, vector<4x4xf32>
    %c0_5 = arith.constant 0 : index
    %c0_6 = arith.constant 0 : index
    %3 = vector.load %arg5[%c0_5, %c0_6] : memref<1x4xf32, #tpu.memory_space<vmem>>, vector<1x4xf32>
    %c0_7 = arith.constant 0 : index
    %c0_8 = arith.constant 0 : index
    %4 = vector.load %arg6[%c0_7, %c0_8] : memref<2x2xf32, #tpu.memory_space<vmem>>, vector<2x2xf32>
    %c0_9 = arith.constant 0 : index
    %c0_10 = arith.constant 0 : index
    %5 = vector.load %arg7[%c0_9, %c0_10] : memref<2x1xf32, #tpu.memory_space<vmem>>, vector<2x1xf32>
    %c0_11 = arith.constant 0 : index
    %c0_12 = arith.constant 0 : index
    %6 = vector.load %arg8[%c0_11, %c0_12] : memref<8x2xf32, #tpu.memory_space<vmem>>, vector<8x2xf32>
    %c0_13 = arith.constant 0 : index
    %c0_14 = arith.constant 0 : index
    %7 = vector.load %arg9[%c0_13, %c0_14] : memref<8x1xf32, #tpu.memory_space<vmem>>, vector<8x1xf32>
    %c0_i32 = arith.constant 0 : i32
    %8 = arith.index_cast %c0_i32 : i32 to index
    %c0_15 = arith.constant 0 : index
    %c0_16 = arith.constant 0 : index
    %9 = vector.load %arg1[%8, %c0_15, %c0_16] : memref<2x8x256xf32, #tpu.memory_space<vmem>>, vector<1x8x256xf32>
    %10 = vector.shape_cast %9 : vector<1x8x256xf32> to vector<8x256xf32>
    %11 = arith.truncf %10 : vector<8x256xf32> to vector<8x256xbf16>
    %cst = arith.constant dense<0.000000e+00> : vector<6x256xf32>
    %12 = tpu.matmul %0, %11, %cst {dimension_numbers = #tpu.dot_dimension_numbers<[1], [0], [0], [1], [0, 0, 1, 1], [], []>} : vector<6x8xbf16>, vector<8x256xbf16>, vector<6x256xf32> -> vector<6x256xf32>
    %13 = vector.broadcast %1 : vector<6x1xf32> to vector<6x256xf32>
    %14 = arith.addf %12, %13 : vector<6x256xf32>
    %15 = arith.truncf %14 : vector<6x256xf32> to vector<6x256xbf16>
    %16 = vector.extract_strided_slice %15 {offsets = [0, 0], sizes = [4, 256], strides = [1, 1]} : vector<6x256xbf16> to vector<4x256xbf16>
    %17 = vector.extract_strided_slice %15 {offsets = [4, 0], sizes = [2, 256], strides = [1, 1]} : vector<6x256xbf16> to vector<2x256xbf16>
    %cst_17 = arith.constant dense<0.000000e+00> : vector<2x4xf32>
    %18 = tpu.matmul %17, %16, %cst_17 {dimension_numbers = #tpu.dot_dimension_numbers<[1], [1], [0], [0], [0, 0, 1, 0], [], []>} : vector<2x256xbf16>, vector<4x256xbf16>, vector<2x4xf32> -> vector<2x4xf32>
    %19 = vector.shape_cast %18 : vector<2x4xf32> to vector<1x2x4xf32>
    %cst_18 = arith.constant dense<0xFF800000> : vector<1xf32>
    %20 = vector.multi_reduction <maximumf>, %19, %cst_18 [1, 2] : vector<1x2x4xf32> to vector<1xf32>
    %21 = vector.shape_cast %20 : vector<1xf32> to vector<1x1x1xf32>
    %22 = vector.extract %21[0, 0, 0] : f32 from vector<1x1x1xf32>
    %23 = vector.broadcast %22 : f32 to vector<1x1xf32>
    %24 = vector.broadcast %23 : vector<1x1xf32> to vector<2x4xf32>
    %25 = arith.subf %18, %24 : vector<2x4xf32>
    %26 = math.exp %25 : vector<2x4xf32>
    %27 = vector.shape_cast %26 : vector<2x4xf32> to vector<1x2x4xf32>
    %cst_19 = arith.constant dense<0.000000e+00> : vector<1xf32>
    %28 = vector.multi_reduction <add>, %27, %cst_19 [1, 2] : vector<1x2x4xf32> to vector<1xf32>
    %29 = vector.shape_cast %28 : vector<1xf32> to vector<1x1x1xf32>
    %30 = vector.extract %29[0, 0, 0] : f32 from vector<1x1x1xf32>
    %31 = vector.broadcast %30 : f32 to vector<1x1xf32>
    %32 = tpu.reciprocal %31 : vector<1x1xf32> -> vector<1x1xf32>
    %33 = vector.broadcast %32 : vector<1x1xf32> to vector<2x4xf32>
    %34 = arith.mulf %26, %33 : vector<2x4xf32>
    %cst_20 = arith.constant dense<0.000000e+00> : vector<2x4xf32>
    %35 = tpu.matmul %34, %2, %cst_20 {dimension_numbers = #tpu.dot_dimension_numbers<[1], [1], [0], [0], [0, 0, 1, 0], [], []>} : vector<2x4xf32>, vector<4x4xf32>, vector<2x4xf32> -> vector<2x4xf32>
    %36 = arith.addf %34, %35 : vector<2x4xf32>
    %37 = vector.broadcast %3 : vector<1x4xf32> to vector<2x4xf32>
    %38 = arith.addf %36, %37 : vector<2x4xf32>
    %cst_21 = arith.constant 0.000000e+00 : f32
    %39 = vector.broadcast %cst_21 : f32 to vector<2x4xf32>
    %40 = arith.maximumf %38, %39 : vector<2x4xf32>
    %cst_22 = arith.constant dense<0.000000e+00> : vector<2x4xf32>
    %41 = tpu.matmul %4, %40, %cst_22 {dimension_numbers = #tpu.dot_dimension_numbers<[1], [0], [0], [1], [0, 0, 1, 1], [], []>} : vector<2x2xf32>, vector<2x4xf32>, vector<2x4xf32> -> vector<2x4xf32>
    %42 = vector.broadcast %5 : vector<2x1xf32> to vector<2x4xf32>
    %43 = arith.addf %41, %42 : vector<2x4xf32>
    %cst_23 = arith.constant dense<0.000000e+00> : vector<8x4xf32>
    %44 = tpu.matmul %6, %43, %cst_23 {dimension_numbers = #tpu.dot_dimension_numbers<[1], [0], [0], [1], [0, 0, 1, 1], [], []>} : vector<8x2xf32>, vector<2x4xf32>, vector<8x4xf32> -> vector<8x4xf32>
    %45 = arith.truncf %44 : vector<8x4xf32> to vector<8x4xbf16>
    %cst_24 = arith.constant dense<0.000000e+00> : vector<8x256xf32>
    %46 = tpu.matmul %45, %16, %cst_24 {dimension_numbers = #tpu.dot_dimension_numbers<[1], [0], [0], [1], [0, 0, 1, 1], [], []>} : vector<8x4xbf16>, vector<4x256xbf16>, vector<8x256xf32> -> vector<8x256xf32>
    %47 = vector.broadcast %7 : vector<8x1xf32> to vector<8x256xf32>
    %48 = arith.addf %46, %47 : vector<8x256xf32>
    %49 = arith.index_cast %c0_i32 : i32 to index
    %c0_25 = arith.constant 0 : index
    %c0_26 = arith.constant 0 : index
    %50 = vector.load %arg1[%49, %c0_25, %c0_26] : memref<2x8x256xf32, #tpu.memory_space<vmem>>, vector<1x8x256xf32>
    %51 = vector.shape_cast %50 : vector<1x8x256xf32> to vector<8x256xf32>
    %52 = arith.addf %51, %48 : vector<8x256xf32>
    %53 = arith.index_cast %c0_i32 : i32 to index
    %c0_27 = arith.constant 0 : index
    %c0_28 = arith.constant 0 : index
    %54 = vector.load %arg10[%53, %c0_27, %c0_28] : memref<2x8x256xf32, #tpu.memory_space<vmem>>, vector<1x8x256xf32>
    %55 = vector.shape_cast %54 : vector<1x8x256xf32> to vector<8x256xf32>
    %56 = vector.shape_cast %52 : vector<8x256xf32> to vector<1x8x256xf32>
    tpu.vector_store %arg10[%53, %c0_27, %c0_28], %56 {strides = array<i32>} : memref<2x8x256xf32, #tpu.memory_space<vmem>>, vector<1x8x256xf32>,
    %c1_i32 = arith.constant 1 : i32
    %57 = arith.index_cast %c1_i32 : i32 to index
    %c0_29 = arith.constant 0 : index
    %c0_30 = arith.constant 0 : index
    %58 = vector.load %arg1[%57, %c0_29, %c0_30] : memref<2x8x256xf32, #tpu.memory_space<vmem>>, vector<1x8x256xf32>
    %59 = vector.shape_cast %58 : vector<1x8x256xf32> to vector<8x256xf32>
    %60 = arith.truncf %59 : vector<8x256xf32> to vector<8x256xbf16>
    %cst_31 = arith.constant dense<0.000000e+00> : vector<6x256xf32>
    %61 = tpu.matmul %0, %60, %cst_31 {dimension_numbers = #tpu.dot_dimension_numbers<[1], [0], [0], [1], [0, 0, 1, 1], [], []>} : vector<6x8xbf16>, vector<8x256xbf16>, vector<6x256xf32> -> vector<6x256xf32>
    %62 = vector.broadcast %1 : vector<6x1xf32> to vector<6x256xf32>
    %63 = arith.addf %61, %62 : vector<6x256xf32>
    %64 = arith.truncf %63 : vector<6x256xf32> to vector<6x256xbf16>
    %65 = vector.extract_strided_slice %64 {offsets = [0, 0], sizes = [4, 256], strides = [1, 1]} : vector<6x256xbf16> to vector<4x256xbf16>
    %66 = vector.extract_strided_slice %64 {offsets = [4, 0], sizes = [2, 256], strides = [1, 1]} : vector<6x256xbf16> to vector<2x256xbf16>
    %cst_32 = arith.constant dense<0.000000e+00> : vector<2x4xf32>
    %67 = tpu.matmul %66, %65, %cst_32 {dimension_numbers = #tpu.dot_dimension_numbers<[1], [1], [0], [0], [0, 0, 1, 0], [], []>} : vector<2x256xbf16>, vector<4x256xbf16>, vector<2x4xf32> -> vector<2x4xf32>
    %68 = vector.shape_cast %67 : vector<2x4xf32> to vector<1x2x4xf32>
    %cst_33 = arith.constant dense<0xFF800000> : vector<1xf32>
    %69 = vector.multi_reduction <maximumf>, %68, %cst_33 [1, 2] : vector<1x2x4xf32> to vector<1xf32>
    %70 = vector.shape_cast %69 : vector<1xf32> to vector<1x1x1xf32>
    %71 = vector.extract %70[0, 0, 0] : f32 from vector<1x1x1xf32>
    %72 = vector.broadcast %71 : f32 to vector<1x1xf32>
    %73 = vector.broadcast %72 : vector<1x1xf32> to vector<2x4xf32>
    %74 = arith.subf %67, %73 : vector<2x4xf32>
    %75 = math.exp %74 : vector<2x4xf32>
    %76 = vector.shape_cast %75 : vector<2x4xf32> to vector<1x2x4xf32>
    %cst_34 = arith.constant dense<0.000000e+00> : vector<1xf32>
    %77 = vector.multi_reduction <add>, %76, %cst_34 [1, 2] : vector<1x2x4xf32> to vector<1xf32>
    %78 = vector.shape_cast %77 : vector<1xf32> to vector<1x1x1xf32>
    %79 = vector.extract %78[0, 0, 0] : f32 from vector<1x1x1xf32>
    %80 = vector.broadcast %79 : f32 to vector<1x1xf32>
    %81 = tpu.reciprocal %80 : vector<1x1xf32> -> vector<1x1xf32>
    %82 = vector.broadcast %81 : vector<1x1xf32> to vector<2x4xf32>
    %83 = arith.mulf %75, %82 : vector<2x4xf32>
    %cst_35 = arith.constant dense<0.000000e+00> : vector<2x4xf32>
    %84 = tpu.matmul %83, %2, %cst_35 {dimension_numbers = #tpu.dot_dimension_numbers<[1], [1], [0], [0], [0, 0, 1, 0], [], []>} : vector<2x4xf32>, vector<4x4xf32>, vector<2x4xf32> -> vector<2x4xf32>
    %85 = arith.addf %83, %84 : vector<2x4xf32>
    %86 = vector.broadcast %3 : vector<1x4xf32> to vector<2x4xf32>
    %87 = arith.addf %85, %86 : vector<2x4xf32>
    %cst_36 = arith.constant 0.000000e+00 : f32
    %88 = vector.broadcast %cst_36 : f32 to vector<2x4xf32>
    %89 = arith.maximumf %87, %88 : vector<2x4xf32>
    %cst_37 = arith.constant dense<0.000000e+00> : vector<2x4xf32>
    %90 = tpu.matmul %4, %89, %cst_37 {dimension_numbers = #tpu.dot_dimension_numbers<[1], [0], [0], [1], [0, 0, 1, 1], [], []>} : vector<2x2xf32>, vector<2x4xf32>, vector<2x4xf32> -> vector<2x4xf32>
    %91 = vector.broadcast %5 : vector<2x1xf32> to vector<2x4xf32>
    %92 = arith.addf %90, %91 : vector<2x4xf32>
    %cst_38 = arith.constant dense<0.000000e+00> : vector<8x4xf32>
    %93 = tpu.matmul %6, %92, %cst_38 {dimension_numbers = #tpu.dot_dimension_numbers<[1], [0], [0], [1], [0, 0, 1, 1], [], []>} : vector<8x2xf32>, vector<2x4xf32>, vector<8x4xf32> -> vector<8x4xf32>
    %94 = arith.truncf %93 : vector<8x4xf32> to vector<8x4xbf16>
    %cst_39 = arith.constant dense<0.000000e+00> : vector<8x256xf32>
    %95 = tpu.matmul %94, %65, %cst_39 {dimension_numbers = #tpu.dot_dimension_numbers<[1], [0], [0], [1], [0, 0, 1, 1], [], []>} : vector<8x4xbf16>, vector<4x256xbf16>, vector<8x256xf32> -> vector<8x256xf32>
    %96 = vector.broadcast %7 : vector<8x1xf32> to vector<8x256xf32>
    %97 = arith.addf %95, %96 : vector<8x256xf32>
    %98 = arith.index_cast %c1_i32 : i32 to index
    %c0_40 = arith.constant 0 : index
    %c0_41 = arith.constant 0 : index
    %99 = vector.load %arg1[%98, %c0_40, %c0_41] : memref<2x8x256xf32, #tpu.memory_space<vmem>>, vector<1x8x256xf32>
    %100 = vector.shape_cast %99 : vector<1x8x256xf32> to vector<8x256xf32>
    %101 = arith.addf %100, %97 : vector<8x256xf32>
    %102 = arith.index_cast %c1_i32 : i32 to index
    %c0_42 = arith.constant 0 : index
    %c0_43 = arith.constant 0 : index
    %103 = vector.load %arg10[%102, %c0_42, %c0_43] : memref<2x8x256xf32, #tpu.memory_space<vmem>>, vector<1x8x256xf32>
    %104 = vector.shape_cast %103 : vector<1x8x256xf32> to vector<8x256xf32>
    %105 = vector.shape_cast %101 : vector<8x256xf32> to vector<1x8x256xf32>
    tpu.vector_store %arg10[%102, %c0_42, %c0_43], %105 {strides = array<i32>} : memref<2x8x256xf32, #tpu.memory_space<vmem>>, vector<1x8x256xf32>,
    %c2_i32 = arith.constant 2 : i32
    return
  }
  func.func @transform_0(%arg0: i32) -> (i32, i32, i32) {
    %c0_i32 = arith.constant 0 : i32
    %c0_i32_0 = arith.constant 0 : i32
    %c0_i32_1 = arith.constant 0 : i32
    return %arg0, %c0_i32, %c0_i32_0 : i32, i32, i32
  }
  func.func @transform_1(%arg0: i32) -> (i32, i32) {
    %c0_i32 = arith.constant 0 : i32
    %c0_i32_0 = arith.constant 0 : i32
    %c0_i32_1 = arith.constant 0 : i32
    return %c0_i32, %c0_i32_0 : i32, i32
  }
  func.func @transform_2(%arg0: i32) -> (i32, i32) {
    %c0_i32 = arith.constant 0 : i32
    %c0_i32_0 = arith.constant 0 : i32
    %c0_i32_1 = arith.constant 0 : i32
    return %c0_i32, %c0_i32_0 : i32, i32
  }
  func.func @transform_3(%arg0: i32) -> (i32, i32) {
    %c0_i32 = arith.constant 0 : i32
    %c0_i32_0 = arith.constant 0 : i32
    %c0_i32_1 = arith.constant 0 : i32
    return %c0_i32, %c0_i32_0 : i32, i32
  }
  func.func @transform_4(%arg0: i32) -> (i32, i32) {
    %c0_i32 = arith.constant 0 : i32
    %c0_i32_0 = arith.constant 0 : i32
    %c0_i32_1 = arith.constant 0 : i32
    return %c0_i32, %c0_i32_0 : i32, i32
  }
  func.func @transform_5(%arg0: i32) -> (i32, i32) {
    %c0_i32 = arith.constant 0 : i32
    %c0_i32_0 = arith.constant 0 : i32
    %c0_i32_1 = arith.constant 0 : i32
    return %c0_i32, %c0_i32_0 : i32, i32
  }
  func.func @transform_6(%arg0: i32) -> (i32, i32) {
    %c0_i32 = arith.constant 0 : i32
    %c0_i32_0 = arith.constant 0 : i32
    %c0_i32_1 = arith.constant 0 : i32
    return %c0_i32, %c0_i32_0 : i32, i32
  }
  func.func @transform_7(%arg0: i32) -> (i32, i32) {
    %c0_i32 = arith.constant 0 : i32
    %c0_i32_0 = arith.constant 0 : i32
    %c0_i32_1 = arith.constant 0 : i32
    return %c0_i32, %c0_i32_0 : i32, i32
  }
  func.func @transform_8(%arg0: i32) -> (i32, i32) {
    %c0_i32 = arith.constant 0 : i32
    %c0_i32_0 = arith.constant 0 : i32
    %c0_i32_1 = arith.constant 0 : i32
    return %c0_i32, %c0_i32_0 : i32, i32
  }
  func.func @transform_9(%arg0: i32) -> (i32, i32, i32) {
    %c0_i32 = arith.constant 0 : i32
    %c0_i32_0 = arith.constant 0 : i32
    %c0_i32_1 = arith.constant 0 : i32
    return %arg0, %c0_i32, %c0_i32_0 : i32, i32, i32
  }
}

</mosaic_0001>

<bundles_post_ra>
// kernel: tpu_custom_call.1
= control target key start
LH: loop header
LB: loop body
LE: loop exit
PB: predicated region body
PF: predicated region fallthrough
CT: control target
= control target key end

     0   :  { %14 = vsyncpa [#allocation3], 0  ;;  %s848_s0 = inlined_call_operand.hbm [shape: f32[2,8,256], index: 0, kind: input, shape index: {}]   ;;  %s849_s1 = inlined_call_operand.vmem [shape: bf16[6,8], index: 1, kind: input, shape index: {}]   ;;  %s850_s2 = inlined_call_operand.vmem [shape: f32[6,1], index: 2, kind: input, shape index: {}]   ;;  %s851_s3 = inlined_call_operand.vmem [shape: f32[4,4], index: 3, kind: input, shape index: {}]   ;;  %s852_s4 = inlined_call_operand.vmem [shape: f32[1,4], index: 4, kind: input, shape index: {}]   ;;  %s853_s5 = inlined_call_operand.vmem [shape: f32[2,2], index: 5, kind: input, shape index: {}]   ;;  %s854_s6 = inlined_call_operand.vmem [shape: f32[2,1], index: 6, kind: input, shape index: {}]   ;;  %s855_s7 = inlined_call_operand.vmem [shape: f32[8,2], index: 7, kind: input, shape index: {}]   ;;  %s856_s8 = inlined_call_operand.vmem [shape: f32[8,1], index: 8, kind: input, shape index: {}]   ;;  %s857_s9 = inlined_call_operand.hbm [shape: f32[2,8,256], index: 9, kind: output, shape index: {}]  }
   0x1   :  { %15 = vsyncpa [#allocation4], 0  ;;  %s20_s11 = sshll.u32 %s848_s0, 4  ;;  %s664_s12 = smov [#allocation2]   ;;  %s21_s11 = int_to_ptr.hbm [resolvable:$true] %s20_s11 }
   0x2   :  { %s22_s13 = sshll.u32 %s664_s12, 4  ;;  %s665_s14 = smov 256   ;;  %s23_s13 = int_to_ptr.vmem [resolvable:$true] %s22_s13 }
   0x3   :  { %s666_s15 = smov 16  }
   0x4   :  { %28 = dma.hbm_to_vmem [thread:$0]  %s21_s11, 512, %s23_s13, [#allocation3], %s665_s14, %s665_s14, %s666_s15  }
   0x5   :  { %660 = dma.done.wait [#allocation3], 512  }
   0x6   :  { %661 = vsyncadd [#allocation3], 4294966784  ;;  %v667_v0 = vmov 0   ;;  %v725_v1 = vld [vmem:[#allocation2] sm:$0xff]  ;;  %vm71_vm0 = vcmask 1043456   ;;  %v727_v2 = vld [vmem:[#allocation2 + $0x8] sm:$0xff] }
   0x7   :  { %600 = vset.pattern.permute.xlu0 %v667_v0  ;;  %601 = vset.pattern.permute.xlu1 %v667_v0  ;;  %v60_v3 = vpack.c.bf16 %v725_v1, %v725_v1  ;;  %v61_v4 = vpack.c.bf16 %v727_v2, %v727_v2  ;;  %v51_v5 = vld [vmem:[%s850_s2] sm:$0x3f]  ;;  %vm67_vm1 = vcmask 64512   ;;  %v749_v12 = vld [vmem:[#allocation2 + $0x18] sm:$0xff]  ;;  %vm225_vm2 = vcmask 1041408   ;;  %s554_s10 = sshll.u32 %s857_s9, 4  ;;  %s555_s10 = int_to_ptr.hbm [resolvable:$true] %s554_s10 }
   0x8   :  { %602 = vset.pattern.permute.xlu2 %v667_v0  ;;  %64 = vperm.xlu0 %600, %v51_v5   ;;  %v741_v8 = vld [vmem:[%s849_s1] sm:$0x7]  ;;  %v324_v16 = vpack.c.bf16 %v749_v12, %v749_v12  ;;  %vm142_vm3 = vcmask 25600   ;;  %vm183_vm4 = vcmask 31744   ;;  %vm221_vm9 = vcmask 15360  }
   0x9   :  { %v73_v6 = vsel %vm71_vm0, %v60_v3, 0  ;;  %v76_v7 = vsel %vm71_vm0, %v61_v4, 0  ;;  %v52_v54 = vld [vmem:[%s851_s3] sm:$0xf] }
   0xa   :  { %85 = vmatpush.bf16.msra.mxu0 %v73_v6  ;;  %98 = vmatpush.bf16.msra.mxu1 %v76_v7  ;;  %v329_v21 = vsel %vm71_vm0, %v324_v16, 0  ;;  %v55_v5 = vld [vmem:[%s854_s6] sm:$0x3]  ;;  %v780_v7 = vld [vmem:[#allocation2 + $0x10] sm:$0xff] }
   0xb   :  { %v778_v6 = vld [vmem:[%s852_s4] ss:$0 sm:$0xff] }
   0xc   :  { %v788_v16 = vld [vmem:[%s853_s5] sm:$0x3] }
   0xd   :  { %567 = vmatmul.msk.bf16.vlgmr.msra.gmra.mxu0 %vm67_vm1, %v741_v8  ;;  %568 = vmatmul.msk.bf16.vlgmr.msra.gmra.mxu1 %vm67_vm1, %v741_v8 }
   0xe   :  { %569 = vmatpush.xpose.msk.msrb.mxu0 %vm183_vm4, %v52_v54 }
  0x7a   :  { %v747_v9 = vpop.permute.xlu0 %64 }
  0x8a   :  { %v87_v10 = vpop.f32.mrf.mxu0  ;;  %v100_v11 = vpop.f32.mrf.mxu1 }
  0x8b   :  { %v88_v13 = vadd.f32 %v87_v10, %v747_v9  ;;  %v101_v14 = vadd.f32 %v100_v11, %v747_v9 }
  0x8d   :  { %v104_v15 = vpack.c.bf16 %v101_v14, %v88_v13  ;;  %v323_v13 = vpack.c.bf16 %v780_v7, %v780_v7 }
  0x8f   :  { %v106_v17 = vunpack.c.l.b16 %v104_v15  ;;  %v107_v18 = vunpack.c.h.b16 %v104_v15 }
  0x91   :  { %v108_v19 = vpack.c.b16 %v106_v17, %v106_v17  ;;  %v755_v20 = vpack.c.b16 %v107_v18, %v107_v18  ;;  %v326_v17 = vsel %vm71_vm0, %v323_v13, 0 }
  0x92   :  { %v89_v22 = vpop.f32.mrf.mxu0  ;;  %v102_v23 = vpop.f32.mrf.mxu1 }
  0x93   :  { %123 = vmatpush.bf16.xpose.msra.mxu2 %v108_v19  ;;  %136 = vmatpush.bf16.xpose.msra.mxu3 %v755_v20  ;;  %v285_v24 = vsel %vm225_vm2, %v108_v19, 0  ;;  %v110_v25 = vrot.slane %v108_v19, 2  ;;  %v111_v26 = vrot.slane %v755_v20, 2  ;;  %v803_v22 = vld [vmem:[%s855_s7] sm:$0xff]  ;;  %v288_v23 = vsel %vm225_vm2, %v755_v20, 0 }
  0x9a   :  { %124 = vmatmul.bf16.vlgmr.msra.gmra.mxu2 %v110_v25  ;;  %137 = vmatmul.bf16.vlgmr.msra.gmra.mxu3 %v111_v26 }
  0x9b   :  { %297 = vmatpush.bf16.msrb.mxu3 %v285_v24  ;;  %351 = vmatpush.bf16.msrb.mxu2 %v329_v21 }
  0xaa   :  { %578 = vmatmul.msk.bf16.vlgmr.msrb.gmra.mxu2 %vm67_vm1, %v741_v8 }
 0x11d   :  { %v125_v27 = vpop.f32.mrf.mxu2  ;;  %v138_v28 = vpop.f32.mrf.mxu3 }
 0x11e   :  { %v139_v29 = vadd.f32 %v138_v28, %v125_v27 }
 0x120   :  { %v143_v30 = vsel %vm142_vm3, %v139_v29, -inf }
 0x121   :  { %144 = vmax.xlane.f32.xlu0 %v143_v30 }
 0x125   :  { %v127_v31 = vpop.f32.mrf.mxu2  ;;  %v140_v32 = vpop.f32.mrf.mxu3 }
 0x12d   :  { %v764_v33 = vpop.f32.mrf.mxu2 }
 0x12e   :  { %v354_v24 = vadd.f32 %v764_v33, %v747_v9 }
 0x135   :  { %v355_v34 = vpop.f32.mrf.mxu2 }
 0x194   :  { %v145_v35 = vpop.xlane.xlu0 %144 }
 0x195   :  { %v146_v36 = vrot.slane %v145_v35, 4 }
 0x197   :  { %v147_v37 = vmax.f32 %v145_v35, %v146_v36 }
 0x199   :  { %v148_v38 = vrot.slane %v147_v37, 2 }
 0x19b   :  { %v149_v39 = vmax.f32 %v147_v37, %v148_v38 }
 0x19d   :  { %v150_v40 = vrot.slane %v149_v39, 1 }
 0x19f   :  { %v151_v41 = vmax.f32 %v149_v39, %v150_v40 }
 0x1a1   :  { %587 = vpush %v151_v41 }
 0x1d2   :  { %s588_s1 = spop %587 }
 0x1d3   :  { %v153_v42 = vstv %s588_s1 }
 0x1d4   :  { %v154_v43 = vsub.f32 %v139_v29, %v153_v42 }
 0x1d6   :  { %v155_v44 = vmul.f32 1.442695, %v154_v43 }
 0x1d8   :  { %604 = vpow2.f32 %v155_v44 }
 0x1de   :  { %v605_v45 = vpop.eup %604 }
 0x1df   :  { %v157_v46 = vsel %vm142_vm3, %v605_v45, 0.0 }
 0x1e0   :  { %158 = vadd.xlane.f32.xlu1 %v157_v46 }
 0x1f9   :  { %218 = vperm.xlu1 %601, %v55_v5  }
 0x253   :  { %v159_v47 = vpop.xlane.xlu1 %158 }
 0x254   :  { %v160_v48 = vrot.slane %v159_v47, 4 }
 0x256   :  { %v161_v49 = vadd.f32 %v160_v48, %v159_v47 }
 0x258   :  { %v162_v50 = vrot.slane %v161_v49, 2 }
 0x25a   :  { %v163_v51 = vadd.f32 %v162_v50, %v161_v49 }
 0x25c   :  { %v164_v52 = vrot.slane %v163_v51, 1 }
 0x25e   :  { %v165_v53 = vadd.f32 %v164_v52, %v163_v51 }
 0x260   :  { %589 = vpush %v165_v53 }
 0x26b   :  { %v797_v18 = vpop.permute.xlu1 %218 }
 0x291   :  { %s590_s20 = spop %589 }
 0x292   :  { %v167_v55 = vstv %s590_s20 }
 0x293   :  { %606 = vrcp.f32 %v167_v55  ;;  %v179_v59 = vand.u32 2147483648, %v167_v55  ;;  %v177_v61 = vand.u32 2147483647, %v167_v55  ;;  %vm173_vm6 = vweird.f32 %v167_v55 }
 0x295   :  { %v180_v63 = vor.u32 1.1754944e-38, %v179_v59  ;;  %vm178_vm8 = vcmp.eq.f32.partialorder %v177_v61, 8.507059e+37 }
 0x299   :  { %v607_v56 = vpop.eup %606 }
 0x29a   :  { %v169_v57 = vmul.f32 %v607_v56, %v167_v55  ;;  %vm174_vm5 = vweird.f32 %v607_v56 }
 0x29b   :  { %vm175_vm7 = vmor %vm173_vm6, %vm174_vm5 }
 0x29c   :  { %v170_v58 = vsub.f32 1.0, %v169_v57  ;;  %v57_v57 = vld [vmem:[%s856_s8] sm:$0xff]  ;;  %s668_s8 = smov [#allocation5]  }
 0x29d   :  { %s552_s28 = sshll.u32 %s668_s8, 4  ;;  %s553_s28 = int_to_ptr.vmem [resolvable:$true] %s552_s28 }
 0x29e   :  { %v171_v60 = vmul.f32 %v607_v56, %v170_v58 }
 0x2a0   :  { %v172_v62 = vadd.f32 %v607_v56, %v171_v60 }
 0x2a2   :  { %v176_v0 = vsel %vm175_vm7, %v607_v56, %v172_v62 }
 0x2a3   :  { %v181_v3 = vsel %vm178_vm8, %v180_v63, %v176_v0 }
 0x2a4   :  { %v182_v4 = vmul.f32 %v605_v45, %v181_v3 }
 0x2a6   :  { %570 = vmatmul.msk.f32.vlgmr.msrb.gmra.mxu0 %vm183_vm4, %v182_v4 }
 0x323   :  { %v207_v10 = vpop.f32.mrf.mxu0 }
 0x324   :  { %v210_v11 = vadd.f32 %v207_v10, %v182_v4 }
 0x326   :  { %v214_v14 = vadd.f32 %v778_v6, %v210_v11 }
 0x328   :  { %v215_v15 = vmax.f32 %v214_v14, 0.0 }
 0x32a   :  { %571 = vmatpush.msk.msrb.mxu1 %vm225_vm2, %v215_v15 }
 0x32b   :  { %572 = vmatmul.msk.f32.vlgmr.msrb.gmra.mxu1 %vm221_vm9, %v788_v16 }
 0x32c   :  { %338 = vmatpush.bf16.msra.mxu1 %v326_v17 }
 0x330   :  { %579 = vmatpush.xpose.msk.msrb.mxu1 %vm183_vm4, %v52_v54 }
 0x333   :  { %577 = vmatmul.msk.bf16.vlgmr.msra.gmra.mxu1 %vm67_vm1, %v741_v8 }
 0x3a8   :  { %v246_v19 = vpop.f32.mrf.mxu1 }
 0x3a9   :  { %v247_v21 = vadd.f32 %v246_v19, %v797_v18 }
 0x3ab   :  { %573 = vmatpush.msk.msra.mxu0 %vm225_vm2, %v247_v21 }
 0x3ac   :  { %574 = vmatmul.msk.f32.vlgmr.msra.gmra.mxu0 %vm221_vm9, %v803_v22 }
 0x3ad   :  { %310 = vmatpush.bf16.msrb.mxu0 %v288_v23 }
 0x3b0   :  { %v340_v8 = vpop.f32.mrf.mxu1 }
 0x3b1   :  { %v341_v25 = vadd.f32 %v340_v8, %v747_v9 }
 0x3b3   :  { %v357_v26 = vpack.c.bf16 %v354_v24, %v341_v25 }
 0x3b5   :  { %v359_v27 = vunpack.c.l.b16 %v357_v26  ;;  %v360_v28 = vunpack.c.h.b16 %v357_v26 }
 0x3b7   :  { %v813_v29 = vpack.c.b16 %v359_v27, %v359_v27  ;;  %v362_v30 = vpack.c.b16 %v360_v28, %v360_v28 }
 0x3b8   :  { %v342_v31 = vpop.f32.mrf.mxu1 }
 0x3b9   :  { %376 = vmatpush.bf16.xpose.msra.mxu3 %v813_v29  ;;  %389 = vmatpush.bf16.xpose.msra.mxu0 %v362_v30  ;;  %v515_v20 = vsel %vm225_vm2, %v362_v30, 0  ;;  %v363_v9 = vrot.slane %v813_v29, 2  ;;  %v364_v33 = vrot.slane %v362_v30, 2  ;;  %v512_v31 = vsel %vm225_vm2, %v813_v29, 0 }
 0x429   :  { %v272_v32 = vpop.f32.mrf.mxu0 }
 0x42a   :  { %v275_v34 = vpack.c.bf16 %v272_v32, %v272_v32 }
 0x42c   :  { %575 = vmatmul.msk.bf16.vlgmr.msrb.gmra.mxu3 %vm183_vm4, %v275_v34  ;;  %576 = vmatmul.msk.bf16.vlgmr.msrb.gmra.mxu0 %vm183_vm4, %v275_v34 }
 0x42d   :  { %537 = vmatpush.bf16.msrb.mxu3 %v515_v20 }
 0x43c   :  { %377 = vmatmul.bf16.vlgmr.msra.gmra.mxu3 %v363_v9  ;;  %390 = vmatmul.bf16.vlgmr.msra.gmra.mxu0 %v364_v33 }
 0x4a9   :  { %v312_v35 = vpop.f32.mrf.mxu0 }
 0x4af   :  { %v299_v36 = vpop.f32.mrf.mxu3 }
 0x4b1   :  { %v314_v37 = vpop.f32.mrf.mxu0 }
 0x4b7   :  { %v301_v38 = vpop.f32.mrf.mxu3 }
 0x4b9   :  { %v391_v39 = vpop.f32.mrf.mxu0 }
 0x4bf   :  { %v378_v40 = vpop.f32.mrf.mxu3 }
 0x4c0   :  { %v392_v41 = vadd.f32 %v391_v39, %v378_v40 }
 0x4c1   :  { %v393_v42 = vpop.f32.mrf.mxu0 }
 0x4c2   :  { %v395_v43 = vsel %vm142_vm3, %v392_v41, -inf }
 0x4c3   :  { %396 = vmax.xlane.f32.xlu2 %v395_v43 }
 0x4c7   :  { %v380_v44 = vpop.f32.mrf.mxu3 }
 0x536   :  { %v397_v45 = vpop.xlane.xlu2 %396 }
 0x537   :  { %v398_v46 = vrot.slane %v397_v45, 4 }
 0x539   :  { %v399_v47 = vmax.f32 %v397_v45, %v398_v46 }
 0x53b   :  { %v400_v48 = vrot.slane %v399_v47, 2 }
 0x53d   :  { %v401_v49 = vmax.f32 %v399_v47, %v400_v48 }
 0x53f   :  { %v402_v50 = vrot.slane %v401_v49, 1 }
 0x541   :  { %v403_v51 = vmax.f32 %v401_v49, %v402_v50 }
 0x543   :  { %591 = vpush %v403_v51 }
 0x574   :  { %s592_s6 = spop %591 }
 0x575   :  { %v405_v52 = vstv %s592_s6 }
 0x576   :  { %v406_v53 = vsub.f32 %v392_v41, %v405_v52 }
 0x578   :  { %v407_v54 = vmul.f32 1.442695, %v406_v53 }
 0x57a   :  { %608 = vpow2.f32 %v407_v54 }
 0x580   :  { %v609_v55 = vpop.eup %608 }
 0x581   :  { %v409_v56 = vsel %vm142_vm3, %v609_v55, 0.0 }
 0x582   :  { %410 = vadd.xlane.f32.xlu2 %v409_v56 }
 0x59a   :  { %278 = vperm.xlu2 %602, %v57_v57  }
 0x5f5   :  { %v411_v58 = vpop.xlane.xlu2 %410 }
 0x5f6   :  { %v412_v59 = vrot.slane %v411_v58, 4 }
 0x5f8   :  { %v413_v60 = vadd.f32 %v412_v59, %v411_v58 }
 0x5fa   :  { %v414_v61 = vrot.slane %v413_v60, 2 }
 0x5fc   :  { %v415_v62 = vadd.f32 %v414_v61, %v413_v60 }
 0x5fd   :  { %v279_v63 = vpop.permute.xlu2 %278 }
 0x5fe   :  { %v300_v0 = vadd.f32 %v299_v36, %v279_v63  ;;  %v313_v3 = vadd.f32 %v312_v35, %v279_v63  ;;  %v416_v4 = vrot.slane %v415_v62, 1 }
 0x600   :  { %v316_v5 = vadd.f32 %v300_v0, %v725_v1  ;;  %v317_v10 = vadd.f32 %v313_v3, %v727_v2  ;;  %v417_v11 = vadd.f32 %v416_v4, %v415_v62 }
 0x602   :  { %318 = vst [vmem:[#allocation5] sm:$0xff] %v316_v5 }
 0x603   :  { %319 = vst [vmem:[#allocation5 + $0x8] sm:$0xff] %v317_v10 }
 0x604   :  { %593 = vpush %v417_v11 }
 0x635   :  { %s594_s27 = spop %593 }
 0x636   :  { %v419_v13 = vstv %s594_s27 }
 0x637   :  { %610 = vrcp.f32 %v419_v13  ;;  %v431_v19 = vand.u32 2147483648, %v419_v13  ;;  %v429_v23 = vand.u32 2147483647, %v419_v13  ;;  %vm425_vm11 = vweird.f32 %v419_v13 }
 0x639   :  { %v432_v1 = vor.u32 1.1754944e-38, %v431_v19  ;;  %vm430_vm13 = vcmp.eq.f32.partialorder %v429_v23, 8.507059e+37 }
 0x63d   :  { %v611_v14 = vpop.eup %610 }
 0x63e   :  { %v421_v15 = vmul.f32 %v611_v14, %v419_v13  ;;  %vm426_vm10 = vweird.f32 %v611_v14 }
 0x63f   :  { %vm427_vm12 = vmor %vm425_vm11, %vm426_vm10 }
 0x640   :  { %v422_v17 = vsub.f32 1.0, %v421_v15 }
 0x642   :  { %v423_v21 = vmul.f32 %v611_v14, %v422_v17 }
 0x644   :  { %v424_v8 = vadd.f32 %v611_v14, %v423_v21 }
 0x646   :  { %v428_v24 = vsel %vm427_vm12, %v611_v14, %v424_v8 }
 0x647   :  { %v433_v2 = vsel %vm430_vm13, %v432_v1, %v428_v24 }
 0x648   :  { %v434_v25 = vmul.f32 %v609_v55, %v433_v2 }
 0x64a   :  { %580 = vmatmul.msk.f32.vlgmr.msrb.gmra.mxu1 %vm183_vm4, %v434_v25 }
 0x6c7   :  { %v455_v26 = vpop.f32.mrf.mxu1 }
 0x6c8   :  { %v458_v27 = vadd.f32 %v455_v26, %v434_v25 }
 0x6ca   :  { %v459_v28 = vadd.f32 %v778_v6, %v458_v27 }
 0x6cc   :  { %v460_v30 = vmax.f32 %v459_v28, 0.0 }
 0x6ce   :  { %581 = vmatpush.msk.msra.mxu2 %vm225_vm2, %v460_v30 }
 0x6cf   :  { %582 = vmatmul.msk.f32.vlgmr.msra.gmra.mxu2 %vm221_vm9, %v788_v16 }
 0x6d0   :  { %524 = vmatpush.bf16.msrb.mxu2 %v512_v31 }
 0x752   :  { %v481_v32 = vpop.f32.mrf.mxu2 }
 0x753   :  { %v482_v34 = vadd.f32 %v481_v32, %v797_v18 }
 0x755   :  { %583 = vmatpush.msk.msra.mxu1 %vm225_vm2, %v482_v34 }
 0x756   :  { %584 = vmatmul.msk.f32.vlgmr.msra.gmra.mxu1 %vm221_vm9, %v803_v22 }
 0x7d3   :  { %v504_v20 = vpop.f32.mrf.mxu1 }
 0x7d4   :  { %v507_v6 = vpack.c.bf16 %v504_v20, %v504_v20 }
 0x7d6   :  { %585 = vmatmul.msk.bf16.vlgmr.msrb.gmra.mxu2 %vm183_vm4, %v507_v6  ;;  %586 = vmatmul.msk.bf16.vlgmr.msrb.gmra.mxu3 %vm183_vm4, %v507_v6 }
 0x859   :  { %v526_v9 = vpop.f32.mrf.mxu2  ;;  %v539_v16 = vpop.f32.mrf.mxu3 }
 0x85a   :  { %v527_v33 = vadd.f32 %v526_v9, %v279_v63  ;;  %v540_v35 = vadd.f32 %v539_v16, %v279_v63 }
 0x85c   :  { %v543_v18 = vadd.f32 %v527_v33, %v780_v7  ;;  %v544_v22 = vadd.f32 %v540_v35, %v749_v12 }
 0x85e   :  { %546 = vst [vmem:[#allocation5 + $0x10] sm:$0xff] %v543_v18 }
 0x85f   :  { %547 = vst [vmem:[#allocation5 + $0x18] sm:$0xff] %v544_v22 }
 0x860   :  { %560 = dma.vmem_to_hbm [thread:$0]  %s553_s28, 512, %s555_s10, [#allocation4], %s665_s14, %s665_s14, %s666_s15  }
 0x861   :  { %v528_v29 = vpop.f32.mrf.mxu2  ;;  %v541_v36 = vpop.f32.mrf.mxu3 }
 0x862   :  { %662 = dma.done.wait [#allocation4], 512  }
 0x863   :  { %663 = vsyncadd [#allocation4], 4294966784 }
 0x864   :  { %565 = vsyncpa [#allocation3], 1 }
 0x865   :  { %566 = vsyncpa [#allocation4], 1 }

</bundles_post_ra>
